<compile_context>
chip_gen: v7x
topology: tpu7x:2x2x1
jax: 0.10.0
libtpu: 0.0.40
codegen_flags: <defaults>
</compile_context>

<pallas_src>
import jax
import jax.numpy as jnp
from jax.experimental import pallas as pl
from jax.experimental.pallas import tpu as pltpu


def _neck_kernel(x_ref, w_ref, b_ref, og_ref, of_ref):
    # x_ref : (1, C, St)       one batch element's flattened NCHW input tile
    # w_ref : (Ct, C)          fused 1x1-conv weights (gaze rows, pad, face rows)
    # b_ref : (Ct, 1)          fused biases (broadcast over the lane / HW axis)
    # og_ref: (1, Cg_pad, St)  gaze branch output tile
    # of_ref: (1, Cf, St)      face branch output tile
    cg = og_ref.shape[1]
    out = jnp.dot(w_ref[...], x_ref[0],
                  preferred_element_type=jnp.float32) + b_ref[...]
    og_ref[0] = out[:cg, :].astype(og_ref.dtype)
    of_ref[0] = out[cg:, :].astype(of_ref.dtype)


def _vmem_budgets():
    """(per-step block-set budget, vmem_limit_bytes), generation-aware."""
    try:
        vmem_bytes = pltpu.get_tpu_info().vmem_capacity_bytes
    except Exception:
        vmem_bytes = 64 * 1024 * 1024  # conservative default
    if vmem_bytes <= 64 * 1024 * 1024:          # v7x-class: 64 MiB / TC
        return 6 * 1024 * 1024, 32 * 1024 * 1024
    return 16 * 1024 * 1024, 64 * 1024 * 1024   # v5e / v6e: 128 MiB


def _pick_spatial_tile(C, Ct, HW, x_itemsize, w_itemsize, budget):
    """Pick the lane (HW) tile St for a one-batch block set."""
    w_bytes = Ct * (C + 1) * w_itemsize

    def step_bytes(st):
        return (C + Ct) * st * x_itemsize + w_bytes

    # Prefer the full spatial row: fully contiguous input/output DMA descriptors.
    if step_bytes(HW) <= budget:
        return HW
    # Otherwise a fixed lane-dense tile (multiple of 128); the grid uses cdiv so
    # a partial last block is allowed rather than shrinking to narrow tiles.
    avail = max(budget - w_bytes, 0)
    st = (avail // ((C + Ct) * x_itemsize)) // 128 * 128
    st = max(st, 128)
    hw_pad = pl.cdiv(HW, 128) * 128
    return min(st, hw_pad)


def base_neck_forward(x, w_gaze, b_gaze, w_face, b_face):
    """x: [B, C, H, W] (NCHW).  Returns (reduce_gaze, reduce_face) flattened to
    [B, C_gaze*H*W] and [B, C_face*H*W] — matching .view(batch, -1) on the NCHW
    outputs of the two 1x1-conv reduce layers."""
    B, C, H, W = x.shape
    HW = H * W
    Cg = w_gaze.shape[0]
    Cf = w_face.shape[0]

    # Sublane-align the gaze/face split point so the in-kernel slices of the
    # (Ct, St) result never cross an (8,128) tile boundary.
    sub = max(8, 32 // jnp.dtype(x.dtype).itemsize)
    pad_g = (-Cg) % sub
    if pad_g:
        w_gaze_p = jnp.concatenate(
            [w_gaze, jnp.zeros((pad_g, C), dtype=w_gaze.dtype)], axis=0)
        b_gaze_p = jnp.concatenate(
            [b_gaze, jnp.zeros((pad_g,), dtype=b_gaze.dtype)], axis=0)
    else:
        w_gaze_p, b_gaze_p = w_gaze, b_gaze
    Cg_pad = Cg + pad_g
    Ct = Cg_pad + Cf

    x_flat = x.reshape(B, C, HW)
    w_cat = jnp.concatenate([w_gaze_p, w_face], axis=0)                  # (Ct, C)
    b_cat = jnp.concatenate([b_gaze_p, b_face], axis=0).reshape(Ct, 1)   # (Ct, 1)

    budget, vmem_limit = _vmem_budgets()
    St = _pick_spatial_tile(C, Ct, HW,
                            jnp.dtype(x.dtype).itemsize,
                            jnp.dtype(w_cat.dtype).itemsize,
                            budget)
    # v7x has 2 TensorCores: guarantee >= 2 grid steps along a parallel axis.
    if B * pl.cdiv(HW, St) < 2 and HW > 128:
        St = max(128, ((pl.cdiv(HW, 2) + 127) // 128) * 128)

    grid = (B, pl.cdiv(HW, St))

    grid_spec = pltpu.PrefetchScalarGridSpec(
        num_scalar_prefetch=0,
        grid=grid,
        in_specs=[
            pl.BlockSpec((1, C, St), lambda b, s: (b, 0, s)),
            pl.BlockSpec((Ct, C), lambda b, s: (0, 0)),   # constant block -> no re-DMA
            pl.BlockSpec((Ct, 1), lambda b, s: (0, 0)),
        ],
        out_specs=[
            pl.BlockSpec((1, Cg_pad, St), lambda b, s: (b, 0, s)),
            pl.BlockSpec((1, Cf, St), lambda b, s: (b, 0, s)),
        ],
    )

    out_gaze, out_face = pl.pallas_call(
        _neck_kernel,
        grid_spec=grid_spec,
        out_shape=(
            jax.ShapeDtypeStruct((B, Cg_pad, HW), x.dtype),
            jax.ShapeDtypeStruct((B, Cf, HW), x.dtype),
        ),
        compiler_params=pltpu.CompilerParams(
            dimension_semantics=("parallel", "parallel"),
            vmem_limit_bytes=vmem_limit,
        ),
    )(x_flat, w_cat, b_cat)

    if pad_g:
        out_gaze = out_gaze[:, :Cg, :]

    # .view(batch_size, -1) on an NCHW conv output == this reshape
    return out_gaze.reshape(B, Cg * HW), out_face.reshape(B, Cf * HW)


if __name__ == "__main__":
    # Small shapes consistent with the forward pass
    B, C, H, W = 2, 4, 16, 16
    C_GAZE, C_FACE = 8, 8

    key = jax.random.PRNGKey(0)
    kx, kwg, kbg, kwf, kbf = jax.random.split(key, 5)

    x = jax.random.normal(kx, (B, C, H, W), dtype=jnp.float32)
    # Deterministic synthetic parameters for the two 1x1-conv reduce layers
    w_gaze = jax.random.normal(kwg, (C_GAZE, C), dtype=jnp.float32) * 0.1
    b_gaze = jax.random.normal(kbg, (C_GAZE,), dtype=jnp.float32) * 0.1
    w_face = jax.random.normal(kwf, (C_FACE, C), dtype=jnp.float32) * 0.1
    b_face = jax.random.normal(kbf, (C_FACE,), dtype=jnp.float32) * 0.1

    reduce_gaze, reduce_face = base_neck_forward(x, w_gaze, b_gaze, w_face, b_face)
    jax.block_until_ready((reduce_gaze, reduce_face))

    # Pure-JAX reference (1x1 conv via einsum, then flatten NCHW)
    ref_gaze = (jnp.einsum("oc,bchw->bohw", w_gaze, x)
                + b_gaze[None, :, None, None]).reshape(B, -1)
    ref_face = (jnp.einsum("oc,bchw->bohw", w_face, x)
                + b_face[None, :, None, None]).reshape(B, -1)

    assert reduce_gaze.shape == (B, C_GAZE * H * W)
    assert reduce_face.shape == (B, C_FACE * H * W)
    assert jnp.allclose(reduce_gaze, ref_gaze, atol=1e-5)
    assert jnp.allclose(reduce_face, ref_face, atol=1e-5)

    print("KERNEL_OK")
</pallas_src>

<mosaic_0001>
module attributes {stable_mosaic.version = 11 : i64} {
  func.func @_neck_kernel(%arg0: i32, %arg1: i32, %arg2: memref<1x4x256xf32, #tpu.memory_space<vmem>>, %arg3: memref<16x4xf32, #tpu.memory_space<vmem>>, %arg4: memref<16x1xf32, #tpu.memory_space<vmem>>, %arg5: memref<1x8x256xf32, #tpu.memory_space<vmem>>, %arg6: memref<1x8x256xf32, #tpu.memory_space<vmem>>) attributes {dimension_semantics = [#tpu.dimension_semantics<parallel>, #tpu.dimension_semantics<parallel>], iteration_bounds = array<i64: 2, 1>, scalar_prefetch = 0 : i64, scratch_operands = 0 : i64, tpu.core_type = #tpu.core_type<tc>, window_params = [{transform_indices = @transform_0, window_bounds = array<i64: 1, 4, 256>}, {pipeline_mode = #tpu.pipeline_mode<synchronous>, transform_indices = @transform_1, window_bounds = array<i64: 16, 4>}, {pipeline_mode = #tpu.pipeline_mode<synchronous>, transform_indices = @transform_2, window_bounds = array<i64: 16, 1>}, {transform_indices = @transform_3, window_bounds = array<i64: 1, 8, 256>}, {transform_indices = @transform_4, window_bounds = array<i64: 1, 8, 256>}]} {
    %c0 = arith.constant 0 : index
    %c0_0 = arith.constant 0 : index
    %0 = vector.load %arg3[%c0, %c0_0] : memref<16x4xf32, #tpu.memory_space<vmem>>, vector<16x4xf32>
    %c0_1 = arith.constant 0 : index
    %c0_2 = arith.constant 0 : index
    %c0_3 = arith.constant 0 : index
    %1 = vector.load %arg2[%c0_1, %c0_2, %c0_3] : memref<1x4x256xf32, #tpu.memory_space<vmem>>, vector<1x4x256xf32>
    %2 = vector.shape_cast %1 : vector<1x4x256xf32> to vector<4x256xf32>
    %cst = arith.constant dense<0.000000e+00> : vector<16x256xf32>
    %3 = tpu.matmul %0, %2, %cst {dimension_numbers = #tpu.dot_dimension_numbers<[1], [0], [0], [1], [0, 0, 1, 1], [], []>} : vector<16x4xf32>, vector<4x256xf32>, vector<16x256xf32> -> vector<16x256xf32>
    %c0_4 = arith.constant 0 : index
    %c0_5 = arith.constant 0 : index
    %4 = vector.load %arg4[%c0_4, %c0_5] : memref<16x1xf32, #tpu.memory_space<vmem>>, vector<16x1xf32>
    %5 = vector.broadcast %4 : vector<16x1xf32> to vector<16x256xf32>
    %6 = arith.addf %3, %5 : vector<16x256xf32>
    %7 = vector.extract_strided_slice %6 {offsets = [0, 0], sizes = [8, 256], strides = [1, 1]} : vector<16x256xf32> to vector<8x256xf32>
    %c0_6 = arith.constant 0 : index
    %c0_7 = arith.constant 0 : index
    %c0_8 = arith.constant 0 : index
    %8 = vector.load %arg5[%c0_6, %c0_7, %c0_8] : memref<1x8x256xf32, #tpu.memory_space<vmem>>, vector<1x8x256xf32>
    %9 = vector.shape_cast %8 : vector<1x8x256xf32> to vector<8x256xf32>
    %10 = vector.shape_cast %7 : vector<8x256xf32> to vector<1x8x256xf32>
    tpu.vector_store %arg5[%c0_6, %c0_7, %c0_8], %10 {strides = array<i32>} : memref<1x8x256xf32, #tpu.memory_space<vmem>>, vector<1x8x256xf32>,
    %11 = vector.extract_strided_slice %6 {offsets = [8, 0], sizes = [8, 256], strides = [1, 1]} : vector<16x256xf32> to vector<8x256xf32>
    %c0_9 = arith.constant 0 : index
    %c0_10 = arith.constant 0 : index
    %c0_11 = arith.constant 0 : index
    %12 = vector.load %arg6[%c0_9, %c0_10, %c0_11] : memref<1x8x256xf32, #tpu.memory_space<vmem>>, vector<1x8x256xf32>
    %13 = vector.shape_cast %12 : vector<1x8x256xf32> to vector<8x256xf32>
    %14 = vector.shape_cast %11 : vector<8x256xf32> to vector<1x8x256xf32>
    tpu.vector_store %arg6[%c0_9, %c0_10, %c0_11], %14 {strides = array<i32>} : memref<1x8x256xf32, #tpu.memory_space<vmem>>, vector<1x8x256xf32>,
    return
  }
  func.func @transform_0(%arg0: i32, %arg1: i32) -> (i32, i32, i32) {
    %c0_i32 = arith.constant 0 : i32
    %c0_i32_0 = arith.constant 0 : i32
    return %arg0, %c0_i32, %arg1 : i32, i32, i32
  }
  func.func @transform_1(%arg0: i32, %arg1: i32) -> (i32, i32) {
    %c0_i32 = arith.constant 0 : i32
    %c0_i32_0 = arith.constant 0 : i32
    %c0_i32_1 = arith.constant 0 : i32
    return %c0_i32, %c0_i32_0 : i32, i32
  }
  func.func @transform_2(%arg0: i32, %arg1: i32) -> (i32, i32) {
    %c0_i32 = arith.constant 0 : i32
    %c0_i32_0 = arith.constant 0 : i32
    %c0_i32_1 = arith.constant 0 : i32
    return %c0_i32, %c0_i32_0 : i32, i32
  }
  func.func @transform_3(%arg0: i32, %arg1: i32) -> (i32, i32, i32) {
    %c0_i32 = arith.constant 0 : i32
    %c0_i32_0 = arith.constant 0 : i32
    return %arg0, %c0_i32, %arg1 : i32, i32, i32
  }
  func.func @transform_4(%arg0: i32, %arg1: i32) -> (i32, i32, i32) {
    %c0_i32 = arith.constant 0 : i32
    %c0_i32_0 = arith.constant 0 : i32
    return %arg0, %c0_i32, %arg1 : i32, i32, i32
  }
}

</mosaic_0001>

<bundles_post_ra>
// kernel: tpu_custom_call.1
= control target key start
LH: loop header
LB: loop body
LE: loop exit
PB: predicated region body
PF: predicated region fallthrough
CT: control target
= control target key end

     0   :  { %10 = vsyncpa [#allocation3], 0  ;;  %s888_s0 = inlined_call_operand.vmem [shape: f32[2,4,256], index: 0, kind: input, shape index: {}]   ;;  %s889_s1 = inlined_call_operand.vmem [shape: f32[16,4], index: 1, kind: input, shape index: {}]   ;;  %s890_s2 = inlined_call_operand.vmem [shape: f32[16,1], index: 2, kind: input, shape index: {}]   ;;  %s891_s3 = inlined_call_operand.hbm [shape: f32[2,8,256], index: 3, kind: output, shape index: {0}]   ;;  %s892_s4 = inlined_call_operand.hbm [shape: f32[2,8,256], index: 4, kind: output, shape index: {1}]  }
   0x1   :  { %12 = vsyncpa [#allocation3 + $0x1], 0 }
   0x2   :  { %13 = vsyncpa [#allocation5], 0 }
   0x3   :  { %15 = vsyncpa [#allocation5 + $0x1], 0  ;;  %s731_s15 = smov 0   ;;  %s733_s16 = smov 0  }
   0x4   :  { %s735_s17 = smov 0   ;;  %s737_s18 = smov 0  }
   0x5   :  { %s739_s19 = smov 0   ;;  %s741_s20 = smov 0  }
   0x6 LB: > { %s500_s21 = sadd.s32 4294967295, %s700_s20   ;;  %s501_s22 = sadd.s32 4294967294, %s700_s20   ;;  %s700_s20 = sphi %s741_s20, %s21_s20   ;;  %s696_s19 = sphi %s739_s19, %s899_s19   ;;  %s692_s18 = sphi %s737_s18, %s898_s18   ;;  %s688_s17 = sphi %s735_s17, %s897_s17   ;;  %s684_s16 = sphi %s733_s16, %s896_s16   ;;  %s680_s15 = sphi %s731_s15, %s895_s15  }
   0x7   : > { %s33_s23 = sadd.s32 1, %s696_s19  ;;  %s112_s24 = sadd.s32 1, %s688_s17 }
   0x8   : > { %p35_p0 = scmp.ge.s32.totalorder %s33_s23, 2  ;;  %p122_p1 = scmp.ne.s32.totalorder %s688_s17, %s684_s16 }
   0x9   : > { %p123_p2 = scmp.eq.s32.totalorder %s500_s21, 1  ;;  %p128_p3 = scmp.ne.s32.totalorder %s684_s16, %s680_s15 }
   0xa   : > { %s901_s23 = smov (%p35_p0, %s33_s23), 0  ;;  %p129_p5 = scmp.eq.s32.totalorder %s501_s22, 1 }
   0xb   : > { %p771_p4 = por %p123_p2, %p122_p1  ;;  %s107_s26 = ssub.s32 %s696_s19, %s901_s23 }
   0xc   : > { %p504_p6 = scmp.ge.s32.totalorder %s700_s20, 1  ;;  %p110_p7 = scmp.eq.s32.totalorder %s107_s26, 0 }
   0xd   : > { %p778_p8 = por %p129_p5, %p128_p3  ;;  %p194_p9 = scmp.lt.s32.totalorder %s700_s20, 3 }
   0xe   : > { %s784_s28 = scalar_select %p110_p7, %s688_s17, %s112_s24  }
   0xf   : > { %p195_p10 = pnand %p504_p6, %p194_p9 }
  0x10   : > { %p230_p11 = scmp.lt.s32.totalorder (!%p195_p10), %s692_s18, 1  ;;  %v702_v0 = vmov (!%p195_p10), 0.0   ;;  %v244_v1 = vld [vmem:[%s890_s2] sm:$0xff] (!%p195_p10)  ;;  %v703_v2 = vmov (!%p195_p10), 0   ;;  %v245_v3 = vld [vmem:[%s890_s2 + $0x8] sm:$0xff] (!%p195_p10)  ;;  %vm265_vm0 = vcmask (!%p195_p10), 1043456  }
  0x11   : > { %198 = sbr.rel (%p195_p10) target bundleno = 285 (0x11d), region = 32  ;;  %334 = vmatprep.mubr.f32.mxu0 (!%p195_p10), %v702_v0  ;;  %340 = vmatprep.mubr.f32.mxu1 (!%p195_p10), %v702_v0  ;;  %v241_v6 = vld [vmem:[%s889_s1] sm:$0xff] (!%p195_p10)  ;;  %vm258_vm1 = vcmask (!%p195_p10), 31744   ;;  %v242_v7 = vld [vmem:[%s889_s1 + $0x8] sm:$0xff] (!%p195_p10)  ;;  %s804_s22 = sand.u32 (!%p195_p10), 1, %s684_s16  }
  0x12   : > { %588 = vset.pattern.permute.xlu0 (!%p195_p10), %v703_v2  ;;  %s505_s24 = sshll.u32 (!%p195_p10), %s804_s22, 4  ;;  %s522_s26 = sshll.u32 (!%p195_p10), %s692_s18, 8 }
  0x13   : > { %248 = vperm.xlu0 (!%p195_p10), %588, %v244_v1   ;;  %s221_s29 = scalar_lea.vmem (!%p195_p10), [#allocation2], %s505_s24  ;;  %s811_s9 = scalar_lea.hbm (!%p195_p10), %s891_s3, %s522_s26 }
  0x14   : > { %s373_s30 = sshll.u32 (!%p195_p10), %s221_s29, 4  ;;  %s352_s12 = scalar_lea.sflag (!%p195_p10), [#allocation3], %s804_s22  ;;  %s813_s30 = int_to_ptr.vmem [resolvable:$true] %s373_s30 }
  0x15   : > { %s590_s13 = scalar_lea.vmem (!%p195_p10), %s813_s30, 256  ;;  %s704_s14 = smov (!%p195_p10), [#allocation2]  }
  0x16   : > { %p591_p12 = scmp.ne.s32.totalorder (!%p195_p10), %s813_s30, %s590_s13  ;;  %s594_s21 = sshll.u32 (!%p195_p10), %s704_s14, 4  ;;  %s595_s21 = int_to_ptr.vmem [resolvable:$false] %s594_s21 }
  0x17   : > { %253 = vperm.xlu0 (!%p195_p10), %588, %v245_v3   ;;  %p597_p1 = scmp.lt.s32.totalorder (!%p195_p10), %s813_s30, %s595_s21 }
  0x18   : > { %s231_s5 = scalar_select %p230_p11, %s692_s18, 1 }
  0x19   : > { %p592_p13 = pnand %p591_p12, %p771_p4 }
  0x1a   : > { %s521_s6 = sshll.u32 %s231_s5, 3  ;;  %s228_s5 = scalar_lea.vmem [#allocation4], %s505_s24 }
  0x1b   : > { %s237_s11 = scalar_lea.vmem %s888_s0, %s521_s6  ;;  %s389_s6 = sshll.u32 %s228_s5, 4  ;;  %s820_s6 = int_to_ptr.vmem [resolvable:$true] %s389_s6 }
  0x1c   : > { %v243_v4 = vld [vmem:[%s237_s11] sm:$0xff]  ;;  %s818_s11 = scalar_lea.hbm %s892_s4, %s522_s26  ;;  %p593_p0 = pneg %p592_p13 }
  0x1d   : > { %v257_v5 = vcombine.high %v243_v4, %v243_v4  ;;  %s596_s24 = scalar_lea.vmem %s595_s21, 512 }
  0x1e   : > { %p598_p2 = scmp.lt.s32.totalorder %s596_s24, %s590_s13 }
  0x1f   : > { %509 = vmatprep.subr.msk.mxu0 %vm265_vm0, %v257_v5  ;;  %524 = vmatprep.subr.msk.mxu1 %vm265_vm0, %v257_v5 }
  0x20   : > { %510 = vmatpush1.msk.msra.mxu0 %vm265_vm0, %v243_v4  ;;  %525 = vmatpush1.msk.msra.mxu1 %vm265_vm0, %v243_v4  ;;  %p599_p3 = por %p598_p2, %p597_p1 }
  0x21   : > { %511 = vmatmul.mubr.msk.f32.vlgmr.msra.gmra.mrb[0].mxu0 %vm258_vm1, %v241_v6  ;;  %512 = vmatmul.mubr.msk.f32.vlgmr.msra.gmra.mrb[0].mxu1 %vm258_vm1, %v242_v7 }
  0x22   : > { %p600_p5 = pnand %p599_p3, %p593_p0 }
  0x92   : > { %v249_v8 = vpop.permute.xlu0 %248 }
  0x96   : > { %v254_v9 = vpop.permute.xlu0 %253 }
  0xf4   : > { %v336_v10 = vpop.f32.mrb[0].mxu0  ;;  %v342_v11 = vpop.f32.mrb[0].mxu1 }
  0xf5   : > { %v337_v12 = vadd.f32 %v336_v10, %v249_v8  ;;  %v343_v13 = vadd.f32 %v342_v11, %v254_v9  ;;  %v338_v14 = vpop.f32.mrb[1].mxu0  ;;  %v344_v15 = vpop.f32.mrb[1].mxu1 }
  0xf6   : > { %v339_v16 = vadd.f32 %v338_v14, %v249_v8  ;;  %v345_v17 = vadd.f32 %v344_v15, %v254_v9 }
  0xf7   : > { %347 = vst [vmem:[%s221_s29] sm:$0xff] %v337_v12  ;;  %349 = vst [vmem:[%s228_s5] sm:$0xff] %v343_v13 }
  0xf8   : > { %348 = vst [vmem:[%s221_s29 + $0x8] sm:$0xff] %v339_v16  ;;  %350 = vst [vmem:[%s228_s5 + $0x8] sm:$0xff] %v345_v17 }
  0xf9   : > { %603 = shalt.err (!%p600_p5)
}
  0xfa   : > { %s604_s26 = scalar_lea.hbm %s811_s9, 256  ;;  %s608_s7 = scalar_lea.hbm %s891_s3, 512 }
  0xfb   : > { %p605_p6 = scmp.ne.s32.totalorder %s811_s9, %s604_s26  ;;  %p609_p10 = scmp.lt.u32.totalorder %s811_s9, %s891_s3 }
  0xfc   : > { %p610_p11 = scmp.lt.u32.totalorder %s608_s7, %s604_s26  ;;  %p612_p13 = scmp.lt.u32.totalorder %s604_s26, %s811_s9 }
  0xfd   : > { %p606_p7 = pnand %p605_p6, %p771_p4 }
  0xfe   : > { %p611_p12 = por %p610_p11, %p609_p10 }
  0xff   : > { %p607_p9 = pneg %p606_p7 }
 0x100   : > { %p613_p0 = por %p612_p13, %p611_p12 }
 0x102   : > { %p614_p1 = pnand %p613_p0, %p607_p9 }
 0x104   : > { %617 = shalt.err (!%p614_p1)
}
 0x105   : > { %526 = dma.vmem_to_hbm [thread:$0]  (%p771_p4), %s813_s30, 256, %s811_s9, %s352_s12  }
 0x106   : > { %s357_s10 = scalar_lea.sflag [#allocation5], %s804_s22  ;;  %s618_s13 = scalar_lea.vmem %s820_s6, 256 }
 0x107   : > { %p619_p2 = scmp.ne.s32.totalorder %s820_s6, %s618_s13  ;;  %s705_s14 = smov [#allocation4]  }
 0x108   : > { %s622_s21 = sshll.u32 %s705_s14, 4  ;;  %s623_s21 = int_to_ptr.vmem [resolvable:$false] %s622_s21 }
 0x109   : > { %p620_p3 = pnand %p619_p2, %p771_p4  ;;  %s624_s24 = scalar_lea.vmem %s623_s21, 512 }
 0x10a   : > { %p625_p6 = scmp.lt.s32.totalorder %s820_s6, %s623_s21  ;;  %p626_p7 = scmp.lt.s32.totalorder %s624_s24, %s618_s13 }
 0x10b   : > { %p621_p5 = pneg %p620_p3 }
 0x10c   : > { %p627_p9 = por %p626_p7, %p625_p6 }
 0x10e   : > { %p628_p10 = pnand %p627_p9, %p621_p5 }
 0x110   : > { %631 = shalt.err (!%p628_p10)
}
 0x111   : > { %s632_s22 = scalar_lea.hbm %s818_s11, 256  ;;  %s636_s12 = scalar_lea.hbm %s892_s4, 512 }
 0x112   : > { %p633_p11 = scmp.ne.s32.totalorder %s818_s11, %s632_s22  ;;  %p637_p0 = scmp.lt.u32.totalorder %s818_s11, %s892_s4 }
 0x113   : > { %p638_p1 = scmp.lt.u32.totalorder %s636_s12, %s632_s22  ;;  %p640_p3 = scmp.lt.u32.totalorder %s632_s22, %s818_s11 }
 0x114   : > { %p634_p12 = pnand %p633_p11, %p771_p4 }
 0x115   : > { %p639_p2 = por %p638_p1, %p637_p0 }
 0x116   : > { %p635_p13 = pneg %p634_p12 }
 0x117   : > { %p641_p5 = por %p640_p3, %p639_p2 }
 0x119   : > { %p642_p6 = pnand %p641_p5, %p635_p13 }
 0x11b   : > { %645 = shalt.err (!%p642_p6)
}
 0x11c   : > { %527 = dma.vmem_to_hbm [thread:$0]  (%p771_p4), %s820_s6, 256, %s818_s11, %s357_s10  }
 0x11d PF: > { %p537_p7 = scmp.ge.s32.totalorder %s700_s20, 2  ;;  %s401_s5 = sand.u32 1, %s680_s15  }
 0x11e   : > { %s402_s7 = scalar_lea.sflag [#allocation3], %s401_s5 }
 0x11f   : > { %p531_p9 = pnand %p537_p7, %p778_p8 }
 0x121   : > { %671 = dma.done.wait (!%p531_p9), %s402_s7, 256  }
 0x122   : > { %673 = vsyncadd (!%p531_p9), %s402_s7, 4294967040  ;;  %s411_s8 = scalar_lea.sflag [#allocation5], %s401_s5 }
 0x123   : > { %675 = dma.done.wait (!%p531_p9), %s411_s8, 256  }
 0x124   : > { %677 = vsyncadd (!%p531_p9), %s411_s8, 4294967040  ;;  %s21_s20 = sadd.s32 1, %s700_s20   ;;  %s895_s15 = smov %s684_s16 }
 0x125   : > { %p18_p10 = scmp.ge.s32.totalorder %s21_s20, 4   ;;  %s896_s16 = smov %s688_s17 }
 0x126   : > { %s897_s17 = smov %s784_s28  ;;  %s898_s18 = smov %s696_s19 }
 0x127   : > { %s899_s19 = smov %s901_s23  ;;  %20 = sbr.rel (!%p18_p10) target bundleno = 6 (0x6), region = 84 }
 0x12e   :  { %416 = vsyncpa [#allocation3], 1 }
 0x12f   :  { %418 = vsyncpa [#allocation3 + $0x1], 1 }
 0x130   :  { %419 = vsyncpa [#allocation5], 1 }
 0x131   :  { %421 = vsyncpa [#allocation5 + $0x1], 1 }

</bundles_post_ra>
